<compile_context>
chip_gen: v6e
topology: v6e:2x2x1
jax: 0.10.0
libtpu: 0.0.40
codegen_flags: <defaults>
</compile_context>

<pallas_src>
import functools
from collections import namedtuple

import jax
import jax.numpy as jnp
from jax.experimental import pallas as pl
from jax.experimental.pallas import tpu as pltpu

_LANE = 128

Plan = namedtuple("Plan", "tk tn D_pad E_pad kloop norm_in_kernel")


def _round_up(x: int, m: int) -> int:
    return ((x + m - 1) // m) * m


def _vmem_capacity_bytes() -> int:
    """Physical VMEM per core (64 MiB v7x, 128 MiB v5e/v6e); safe fallback."""
    try:
        info = pltpu.get_tpu_info()
        for attr in ("vmem_capacity_bytes", "vmem_size_bytes", "vmem_bytes"):
            v = getattr(info, attr, None)
            if v:
                return int(v)
    except Exception:
        pass
    return 64 * 1024 * 1024


def _tile_fp(tm, tk, tn, in_itemsize, out_itemsize, kloop) -> int:
    """Approx per-step VMEM footprint (double-buffered inputs/outputs)."""
    f = 2 * tm * tk * in_itemsize          # x tile
    f += 2 * tk * tn * in_itemsize         # W panel
    f += 2 * tn * 4                        # bias (f32)
    f += 2 * tm * tn * out_itemsize        # output tile
    if kloop:
        f += tm * tn * 4                   # f32 accumulator scratch
    return f


def _plan_wn(D_in, E, in_itemsize, out_itemsize, normalization, budget,
             force_split_norm=False) -> Plan:
    """Batch-independent tiling plan for the W / b padding and the K/N tiles."""
    D_full = _round_up(D_in, _LANE)
    E_full = _round_up(E, _LANE)

    def fp(tm, tk, tn, kloop):
        return _tile_fp(tm, tk, tn, in_itemsize, out_itemsize, kloop)

    # -- embedding (N) tile: keep full E resident when normalizing & feasible.
    norm_in_kernel = False
    if normalization and not force_split_norm:
        norm_in_kernel = fp(8, _LANE, E_full, True) <= budget
    if normalization and norm_in_kernel:
        tn, E_pad = E_full, E_full
    else:
        tn = min(512, E_full)
        E_pad = _round_up(E, tn)

    # -- reduction (K) tile: collapse K when the whole D panel fits VMEM.
    if fp(8, D_full, tn, False) <= int(budget * 0.75):
        tk, D_pad, kloop = D_full, D_full, False
    else:
        kloop = True
        tk = _LANE
        for cand in (1024, 512, 256, 128):
            if fp(8, cand, tn, True) <= int(budget * 0.75):
                tk = cand
                break
        tk = min(tk, D_full)
        D_pad = _round_up(D_in, tk)

    return Plan(tk, tn, D_pad, E_pad, kloop, norm_in_kernel)


# ----------------------------------------------------------------------------
# Kernels
# ----------------------------------------------------------------------------
def _embed_onepass_kernel(x_ref, w_ref, b_ref, o_ref, *, normalize: bool):
    """Single-shot tile: full-K matmul + bias (+ full-row L2 normalize)."""
    y = jnp.dot(x_ref[...], w_ref[...], preferred_element_type=jnp.float32)
    y = y + b_ref[...]                                   # bias bcast [1, tn]
    if normalize:
        # Full (padded) embedding row lives in this tile; padded columns are
        # exact zeros (zero-padded W and b) so the reduce is correct.
        sq = jnp.sum(y * y, axis=-1, keepdims=True)      # XLU
        y = y * jax.lax.rsqrt(sq + 1e-12)                # EUP
    o_ref[...] = y.astype(o_ref.dtype)


def _embed_kloop_kernel(x_ref, w_ref, b_ref, o_ref, acc_ref, *, normalize: bool):
    """Fallback for very large D_in: K-accumulated matmul (P3 accumulator)."""
    k = pl.program_id(2)

    @pl.when(k == 0)
    def _init():
        acc_ref[...] = jnp.zeros_like(acc_ref)

    acc_ref[...] += jnp.dot(x_ref[...], w_ref[...],
                            preferred_element_type=jnp.float32)

    @pl.when(k == pl.num_programs(2) - 1)
    def _finalize():
        y = acc_ref[...] + b_ref[...]
        if normalize:
            sq = jnp.sum(y * y, axis=-1, keepdims=True)
            y = y * jax.lax.rsqrt(sq + 1e-12)
        o_ref[...] = y.astype(o_ref.dtype)


def _rowsq_kernel(y_ref, inv_ref, acc_ref):
    """Per-row sum of squares accumulated across E tiles -> 1/||row||."""
    j = pl.program_id(1)

    @pl.when(j == 0)
    def _init():
        acc_ref[...] = jnp.zeros_like(acc_ref)

    y = y_ref[...]
    acc_ref[...] += jnp.sum(y * y, axis=-1, keepdims=True)

    @pl.when(j == pl.num_programs(1) - 1)
    def _finalize():
        inv_ref[...] = jax.lax.rsqrt(acc_ref[...] + 1e-12)


def _scale_kernel(y_ref, inv_ref, o_ref):
    o_ref[...] = (y_ref[...] * inv_ref[...]).astype(o_ref.dtype)


def _l2_normalize_rows(y, out_dtype, tm, tn, vmem_limit):
    """Split-E normalization (for E too large to keep resident in one tile)."""
    Bp, Ep = y.shape
    inv = pl.pallas_call(
        _rowsq_kernel,
        out_shape=jax.ShapeDtypeStruct((Bp, 1), jnp.float32),
        grid_spec=pltpu.PrefetchScalarGridSpec(
            num_scalar_prefetch=0,
            grid=(Bp // tm, Ep // tn),
            in_specs=[pl.BlockSpec((tm, tn), lambda i, j: (i, j))],
            out_specs=pl.BlockSpec((tm, 1), lambda i, j: (i, 0)),
            scratch_shapes=[pltpu.VMEM((tm, 1), jnp.float32)],
        ),
        compiler_params=pltpu.CompilerParams(
            dimension_semantics=("parallel", "arbitrary"),
            vmem_limit_bytes=vmem_limit,
        ),
    )(y)

    return pl.pallas_call(
        _scale_kernel,
        out_shape=jax.ShapeDtypeStruct((Bp, Ep), out_dtype),
        grid_spec=pltpu.PrefetchScalarGridSpec(
            num_scalar_prefetch=0,
            grid=(Bp // tm, Ep // tn),
            in_specs=[pl.BlockSpec((tm, tn), lambda i, j: (i, j)),
                      pl.BlockSpec((tm, 1), lambda i, j: (i, 0))],
            out_specs=pl.BlockSpec((tm, tn), lambda i, j: (i, j)),
        ),
        compiler_params=pltpu.CompilerParams(
            dimension_semantics=("parallel", "parallel"),
            vmem_limit_bytes=vmem_limit,
        ),
    )(y, inv)


# ----------------------------------------------------------------------------
# Forward wrapper
# ----------------------------------------------------------------------------
def embedding_forward(x, w, b, *, normalization: bool = False,
                      embedding_dim=None, plan: Plan = None, out_dtype=None):
    """Model.forward: x [B, D_in] @ W [+pad] + b -> [B, embedding_dim]."""
    B, D_in = x.shape
    E_valid = int(embedding_dim) if embedding_dim is not None else int(w.shape[1])
    out_dtype = jnp.dtype(out_dtype) if out_dtype is not None else x.dtype
    in_itemsize = jnp.dtype(w.dtype).itemsize
    out_itemsize = jnp.dtype(out_dtype).itemsize

    cap = _vmem_capacity_bytes()
    budget = int(cap * 0.6)
    if plan is None:
        plan = _plan_wn(D_in, E_valid, in_itemsize, out_itemsize,
                        normalization, budget)
    tk, tn, D_pad, E_pad = plan.tk, plan.tn, plan.D_pad, plan.E_pad
    kloop = plan.kloop
    norm_in_kernel = normalization and plan.norm_in_kernel
    split_norm = normalization and not plan.norm_in_kernel
    mm_dtype = jnp.float32 if split_norm else out_dtype   # f32 intermediate
    mm_itemsize = jnp.dtype(mm_dtype).itemsize

    # Operand dtype follows the (possibly pre-cast) weight dtype for the MXU;
    # bias stays f32 (added to the f32 accumulator).
    if x.dtype != w.dtype:
        x = x.astype(w.dtype)
    if b.dtype != jnp.float32:
        b = b.astype(jnp.float32)

    # Zero-pad to tile multiples (no-ops when W/b were pre-padded in __init__).
    if x.shape[1] != D_pad:
        x = jnp.pad(x, ((0, 0), (0, D_pad - x.shape[1])))
    if w.shape != (D_pad, E_pad):
        w = jnp.pad(w, ((0, D_pad - w.shape[0]), (0, E_pad - w.shape[1])))
    if b.shape != (1, E_pad):
        b = jnp.pad(b, ((0, 0), (0, E_pad - b.shape[1])))

    # Per-call row tile: grow toward 512 within the VMEM budget.
    row_mult = max(8, 32 // in_itemsize)          # 8 f32 / 16 bf16 / 32 int8
    tm = row_mult
    for cand in (512, 256, 128, 64, 32, 16, 8):
        if cand < row_mult or cand % row_mult:
            continue
        if _tile_fp(cand, tk, tn, in_itemsize, mm_itemsize, kloop) <= budget:
            tm = cand
            break
    tm = min(tm, _round_up(B, row_mult))
    e_blocks = E_pad // tn
    # v7x has 2 TensorCores sharded over "parallel" axes: avoid a (1,1) grid.
    if e_blocks <= 1 and _round_up(B, tm) // tm < 2 and B >= 2 * row_mult:
        tm = _round_up((B + 1) // 2, row_mult)
    B_pad = _round_up(B, tm)
    if x.shape[0] != B_pad:
        x = jnp.pad(x, ((0, B_pad - x.shape[0]), (0, 0)))

    fp_actual = _tile_fp(tm, tk, tn, in_itemsize, mm_itemsize, kloop)
    vmem_limit = int(min(0.9 * cap, max(2 * fp_actual + (2 << 20), 32 << 20)))

    cost = pl.CostEstimate(
        flops=2 * B_pad * D_pad * E_pad,
        transcendentals=B_pad if normalization else 0,
        bytes_accessed=(B_pad * D_pad * in_itemsize + D_pad * E_pad * in_itemsize
                        + E_pad * 4 + B_pad * E_pad * mm_itemsize),
    )

    if not kloop:
        kernel = functools.partial(_embed_onepass_kernel, normalize=norm_in_kernel)
        y = pl.pallas_call(
            kernel,
            out_shape=jax.ShapeDtypeStruct((B_pad, E_pad), mm_dtype),
            grid_spec=pltpu.PrefetchScalarGridSpec(
                num_scalar_prefetch=0,
                grid=(B_pad // tm, E_pad // tn),
                in_specs=[
                    pl.BlockSpec((tm, tk), lambda i, j: (i, 0)),
                    pl.BlockSpec((tk, tn), lambda i, j: (0, j)),
                    pl.BlockSpec((1, tn), lambda i, j: (0, j)),
                ],
                out_specs=pl.BlockSpec((tm, tn), lambda i, j: (i, j)),
            ),
            compiler_params=pltpu.CompilerParams(
                dimension_semantics=("parallel", "parallel"),
                vmem_limit_bytes=vmem_limit,
            ),
            cost_estimate=cost,
        )(x, w, b)
    else:
        kernel = functools.partial(_embed_kloop_kernel, normalize=norm_in_kernel)
        y = pl.pallas_call(
            kernel,
            out_shape=jax.ShapeDtypeStruct((B_pad, E_pad), mm_dtype),
            grid_spec=pltpu.PrefetchScalarGridSpec(
                num_scalar_prefetch=0,
                grid=(B_pad // tm, E_pad // tn, D_pad // tk),
                in_specs=[
                    pl.BlockSpec((tm, tk), lambda i, j, k: (i, k)),
                    pl.BlockSpec((tk, tn), lambda i, j, k: (k, j)),
                    pl.BlockSpec((1, tn), lambda i, j, k: (0, j)),
                ],
                out_specs=pl.BlockSpec((tm, tn), lambda i, j, k: (i, j)),
                scratch_shapes=[pltpu.VMEM((tm, tn), jnp.float32)],
            ),
            compiler_params=pltpu.CompilerParams(
                dimension_semantics=("parallel", "parallel", "arbitrary"),
                vmem_limit_bytes=vmem_limit,
            ),
            cost_estimate=cost,
        )(x, w, b)

    if split_norm:
        y = _l2_normalize_rows(y, out_dtype, tm, tn, vmem_limit)

    return y[:B, :E_valid].astype(out_dtype)


class PallasModel:
    """JAX/Pallas analogue of the PyTorch `Model` base class."""

    def __init__(self, in_features: int, embedding_dim: int,
                 normalization: bool = False, key=None, compute_dtype=None,
                 out_dtype=None, force_split_norm: bool = False):
        self.in_features = int(in_features)
        self.embedding_dim = int(embedding_dim)
        self.normalization = bool(normalization)
        self.compute_dtype = compute_dtype
        self.out_dtype = out_dtype
        key = key if key is not None else jax.random.PRNGKey(0)
        kw, kb = jax.random.split(key)
        # Deterministic synthetic parameter init (no checkpoint load).
        w = (jax.random.normal(kw, (in_features, embedding_dim), jnp.float32)
             * (1.0 / jnp.sqrt(in_features)))
        b = jax.random.normal(kb, (1, embedding_dim), jnp.float32) * 0.01
        if compute_dtype is not None:
            w = w.astype(compute_dtype)
        self.w = w                       # unpadded (reference / export)
        self.b = b                       # unpadded f32 bias

        # Pre-plan and pre-pad once: the kernel is the only HBM pass over W.
        cap = _vmem_capacity_bytes()
        self._plan = _plan_wn(in_features, embedding_dim,
                              jnp.dtype(w.dtype).itemsize, 4,
                              self.normalization, int(cap * 0.6),
                              force_split_norm=force_split_norm)
        p = self._plan
        self._w_pad = jnp.pad(w, ((0, p.D_pad - in_features),
                                  (0, p.E_pad - embedding_dim)))
        self._b_pad = jnp.pad(b, ((0, 0), (0, p.E_pad - embedding_dim)))

    def forward(self, x):
        return embedding_forward(
            x, self._w_pad, self._b_pad,
            normalization=self.normalization,
            embedding_dim=self.embedding_dim,
            plan=self._plan,
            out_dtype=self.out_dtype,
        )

    __call__ = forward


if __name__ == "__main__":
    key = jax.random.PRNGKey(0)
    kx, kp, kx2, kp2, kx3, kp3, kx4, kw4, kb4 = jax.random.split(key, 9)

    # --- Test 1: tiny shapes, f32, no normalization (single-pass path). ----
    batch, in_features, embedding_dim = 8, 32, 16
    x = jax.random.normal(kx, (batch, in_features), dtype=jnp.float32)
    model = PallasModel(in_features, embedding_dim, normalization=False, key=kp)
    out = jax.block_until_ready(model(x))
    ref = x @ model.w + model.b
    assert out.shape == (batch, embedding_dim)
    assert jnp.allclose(out, ref, atol=1e-4, rtol=1e-4)

    # --- Test 2: bf16 operands, in-kernel L2 norm, 2 batch blocks. ---------
    batch2, in2, emb2 = 384, 1024, 256
    x2 = jax.random.normal(kx2, (batch2, in2), dtype=jnp.float32)
    model2 = PallasModel(in2, emb2, normalization=True, key=kp2,
                         compute_dtype=jnp.bfloat16)
    out2 = jax.block_until_ready(model2(x2))
    ref2 = jnp.dot(x2.astype(jnp.bfloat16), model2.w,
                   preferred_element_type=jnp.float32) + model2.b
    ref2 = ref2 * jax.lax.rsqrt(jnp.sum(ref2 * ref2, axis=-1, keepdims=True)
                                + 1e-12)
    assert out2.shape == (batch2, emb2)
    assert jnp.allclose(out2, ref2, atol=2e-2, rtol=2e-2)

    # --- Test 3: forced split-E normalization (large-E / v7x guard path). --
    batch3, in3, emb3 = 128, 200, 300
    x3 = jax.random.normal(kx3, (batch3, in3), dtype=jnp.float32)
    model3 = PallasModel(in3, emb3, normalization=True, key=kp3,
                         force_split_norm=True)
    out3 = jax.block_until_ready(model3(x3))
    ref3 = x3 @ model3.w + model3.b
    ref3 = ref3 * jax.lax.rsqrt(jnp.sum(ref3 * ref3, axis=-1, keepdims=True)
                                + 1e-12)
    assert out3.shape == (batch3, emb3)
    assert jnp.allclose(out3, ref3, atol=1e-4, rtol=1e-4)

    # --- Test 4: K-loop fallback path (manual plan, 2 K steps). ------------
    batch4, in4, emb4 = 32, 512, 128
    x4 = jax.random.normal(kx4, (batch4, in4), dtype=jnp.float32)
    w4 = jax.random.normal(kw4, (in4, emb4), dtype=jnp.float32) / jnp.sqrt(in4)
    b4 = jax.random.normal(kb4, (1, emb4), dtype=jnp.float32) * 0.01
    plan4 = Plan(tk=256, tn=128, D_pad=512, E_pad=128,
                 kloop=True, norm_in_kernel=False)
    out4 = jax.block_until_ready(
        embedding_forward(x4, w4, b4, normalization=False, plan=plan4))
    ref4 = x4 @ w4 + b4
    assert out4.shape == (batch4, emb4)
    assert jnp.allclose(out4, ref4, atol=1e-4, rtol=1e-4)

    print("KERNEL_OK")
</pallas_src>

<mosaic_0001>
module attributes {stable_mosaic.version = 11 : i64} {
  func.func @_embed_onepass_kernel(%arg0: i32, %arg1: i32, %arg2: memref<8x128xf32, #tpu.memory_space<vmem>>, %arg3: memref<128x128xf32, #tpu.memory_space<vmem>>, %arg4: memref<1x128xf32, #tpu.memory_space<vmem>>, %arg5: memref<8x128xf32, #tpu.memory_space<vmem>>) attributes {dimension_semantics = [#tpu.dimension_semantics<parallel>, #tpu.dimension_semantics<parallel>], iteration_bounds = array<i64: 1, 1>, scalar_prefetch = 0 : i64, scratch_operands = 0 : i64, tpu.core_type = #tpu.core_type<tc>, window_params = [{transform_indices = @transform_0, window_bounds = array<i64: 8, 128>}, {transform_indices = @transform_1, window_bounds = array<i64: 128, 128>}, {transform_indices = @transform_2, window_bounds = array<i64: 1, 128>}, {transform_indices = @transform_3, window_bounds = array<i64: 8, 128>}]} {
    %c0 = arith.constant 0 : index
    %c0_0 = arith.constant 0 : index
    %0 = vector.load %arg2[%c0, %c0_0] : memref<8x128xf32, #tpu.memory_space<vmem>>, vector<8x128xf32>
    %c0_1 = arith.constant 0 : index
    %c0_2 = arith.constant 0 : index
    %1 = vector.load %arg3[%c0_1, %c0_2] : memref<128x128xf32, #tpu.memory_space<vmem>>, vector<128x128xf32>
    %cst = arith.constant dense<0.000000e+00> : vector<8x128xf32>
    %2 = tpu.matmul %0, %1, %cst {dimension_numbers = #tpu.dot_dimension_numbers<[1], [0], [0], [1], [0, 0, 1, 1], [], []>} : vector<8x128xf32>, vector<128x128xf32>, vector<8x128xf32> -> vector<8x128xf32>
    %c0_3 = arith.constant 0 : index
    %c0_4 = arith.constant 0 : index
    %3 = vector.load %arg4[%c0_3, %c0_4] : memref<1x128xf32, #tpu.memory_space<vmem>>, vector<1x128xf32>
    %4 = vector.broadcast %3 : vector<1x128xf32> to vector<8x128xf32>
    %5 = arith.addf %2, %4 : vector<8x128xf32>
    %c0_5 = arith.constant 0 : index
    %c0_6 = arith.constant 0 : index
    %6 = vector.load %arg5[%c0_5, %c0_6] : memref<8x128xf32, #tpu.memory_space<vmem>>, vector<8x128xf32>
    tpu.vector_store %arg5[%c0_5, %c0_6], %5 {strides = array<i32>} : memref<8x128xf32, #tpu.memory_space<vmem>>, vector<8x128xf32>,
    return
  }
  func.func @transform_0(%arg0: i32, %arg1: i32) -> (i32, i32) {
    %c0_i32 = arith.constant 0 : i32
    %c0_i32_0 = arith.constant 0 : i32
    return %arg0, %c0_i32 : i32, i32
  }
  func.func @transform_1(%arg0: i32, %arg1: i32) -> (i32, i32) {
    %c0_i32 = arith.constant 0 : i32
    %c0_i32_0 = arith.constant 0 : i32
    return %c0_i32, %arg1 : i32, i32
  }
  func.func @transform_2(%arg0: i32, %arg1: i32) -> (i32, i32) {
    %c0_i32 = arith.constant 0 : i32
    %c0_i32_0 = arith.constant 0 : i32
    return %c0_i32, %arg1 : i32, i32
  }
  func.func @transform_3(%arg0: i32, %arg1: i32) -> (i32, i32) {
    %c0_i32 = arith.constant 0 : i32
    return %arg0, %arg1 : i32, i32
  }
}

</mosaic_0001>

<bundles_post_ra>
// kernel: tpu_custom_call.1
= control target key start
LH: loop header
LB: loop body
LE: loop exit
PB: predicated region body
PF: predicated region fallthrough
CT: control target
= control target key end

     0   :  { %8 = vsyncpa [#allocation3], 0  ;;  %s317_s0 = inlined_call_operand.hbm [shape: f32[8,128], index: 0, kind: input, shape index: {}]   ;;  %s318_s1 = inlined_call_operand.hbm [shape: f32[128,128], index: 1, kind: input, shape index: {}]   ;;  %s319_s2 = inlined_call_operand.vmem [shape: f32[1,128], index: 2, kind: input, shape index: {}]   ;;  %s320_s3 = inlined_call_operand.hbm [shape: f32[8,128], index: 3, kind: output, shape index: {}]  }
   0x1   :  { %9 = vsyncpa [#allocation6], 0 }
   0x2   :  { %10 = vsyncpa [#allocation4], 0  ;;  %s278_s12 = smov [#allocation2]   ;;  %s279_s14 = smov [#allocation5]  }
   0x3   :  { %s17_s13 = sshll.u32 %s278_s12, 4  ;;  %s26_s15 = sshll.u32 %s279_s14, 4  ;;  %s18_s13 = int_to_ptr.vmem [resolvable:$true] %s17_s13  ;;  %s27_s15 = int_to_ptr.vmem [resolvable:$true] %s26_s15 }
   0x4   :  { %s220_s16 = scalar_lea.vmem %s18_s13, 128  ;;  %p225_p1 = scmp.lt.s32.totalorder %s18_s13, %s18_s13 }
   0x5   :  { %p221_p0 = scmp.ne.s32.totalorder %s18_s13, %s220_s16  ;;  %p226_p2 = scmp.lt.s32.totalorder %s220_s16, %s220_s16 }
   0x7   :  { %p227_p3 = por %p226_p2, %p225_p1 }
   0x9   :  { %p228_p4 = pnand %p227_p3, %p221_p0 }
   0xb   :  { %231 = shalt.err (!%p228_p4)
}
   0xc   :  { %20 = dma.hbm_to_vmem [thread:$0]  %s317_s0, 128, %s18_s13, [#allocation3]  }
   0xd   :  { %s240_s19 = scalar_lea.vmem %s27_s15, 2048  ;;  %p245_p6 = scmp.lt.s32.totalorder %s27_s15, %s27_s15 }
   0xe   :  { %p241_p5 = scmp.ne.s32.totalorder %s27_s15, %s240_s19  ;;  %p246_p7 = scmp.lt.s32.totalorder %s240_s19, %s240_s19 }
  0x10   :  { %p247_p8 = por %p246_p7, %p245_p6 }
  0x12   :  { %p248_p9 = pnand %p247_p8, %p241_p5 }
  0x14   :  { %251 = shalt.err (!%p248_p9)
}
  0x15   :  { %s280_s20 = smov 128   ;;  %s281_s21 = smov 8  }
  0x16   :  { %32 = dma.hbm_to_vmem [thread:$0]  %s318_s1, 2048, %s27_s15, [#allocation6], %s280_s20, %s280_s20, %s281_s21  }
  0x17   :  { %272 = dma.done.wait [#allocation3], 128  }
  0x18   :  { %273 = vsyncadd [#allocation3], 4294967168 }
  0x19   :  { %274 = dma.done.wait [#allocation6], 2048  }
  0x1a   :  { %275 = vsyncadd [#allocation6], 4294965248  ;;  %v282_v0 = vmov 0.0   ;;  %vm283_vm0 = vmmov 0   ;;  %v57_v1 = vld [vmem:[#allocation5 + $0x78] sm:$0xff]  ;;  %v56_v2 = vld [vmem:[#allocation5 + $0x70] sm:$0xff] }
  0x1b   :  { %170 = vmatprep.subr.mxu0 %v282_v0  ;;  %202 = vmatprep.mubr.msk.f32.mxu0 %vm283_vm0, %v282_v0  ;;  %v55_v3 = vld [vmem:[#allocation5 + $0x68] sm:$0xff]  ;;  %v54_v4 = vld [vmem:[#allocation5 + $0x60] sm:$0xff]  ;;  %v53_v5 = vld [vmem:[#allocation5 + $0x58] sm:$0xff]  ;;  %s284_s24 = smov [#allocation7]  }
  0x1c   :  { %171 = vmatpush3.msra.mxu0 %v57_v1  ;;  %v52_v6 = vld [vmem:[#allocation5 + $0x50] sm:$0xff]  ;;  %v51_v7 = vld [vmem:[#allocation5 + $0x48] sm:$0xff]  ;;  %v50_v8 = vld [vmem:[#allocation5 + $0x40] sm:$0xff]  ;;  %s142_s25 = sshll.u32 %s284_s24, 4  ;;  %s143_s25 = int_to_ptr.vmem [resolvable:$true] %s142_s25 }
  0x1d   :  { %172 = vmatprep.subr.mxu0 %v282_v0  ;;  %v49_v9 = vld [vmem:[#allocation5 + $0x38] sm:$0xff]  ;;  %v48_v10 = vld [vmem:[#allocation5 + $0x30] sm:$0xff]  ;;  %v47_v11 = vld [vmem:[#allocation5 + $0x28] sm:$0xff]  ;;  %s252_s26 = scalar_lea.vmem %s143_s25, 128  ;;  %p257_p11 = scmp.lt.s32.totalorder %s143_s25, %s143_s25 }
  0x1e   :  { %173 = vmatpush3.msra.mxu0 %v56_v2  ;;  %v46_v12 = vld [vmem:[#allocation5 + $0x20] sm:$0xff]  ;;  %v45_v13 = vld [vmem:[#allocation5 + $0x18] sm:$0xff]  ;;  %v44_v14 = vld [vmem:[#allocation5 + $0x10] sm:$0xff]  ;;  %p253_p10 = scmp.ne.s32.totalorder %s143_s25, %s252_s26  ;;  %p258_p12 = scmp.lt.s32.totalorder %s252_s26, %s252_s26 }
  0x1f   :  { %174 = vmatprep.subr.mxu0 %v282_v0  ;;  %v43_v15 = vld [vmem:[#allocation5 + $0x8] sm:$0xff]  ;;  %v42_v16 = vld [vmem:[#allocation5] sm:$0xff]  ;;  %v41_v17 = vld [vmem:[#allocation2] sm:$0xff] }
  0x20   :  { %175 = vmatpush3.msra.mxu0 %v55_v3  ;;  %v152_v18 = vld [vmem:[%s319_s2] ss:$0 sm:$0xff]  ;;  %p259_p13 = por %p258_p12, %p257_p11 }
  0x21   :  { %176 = vmatprep.subr.mxu0 %v282_v0 }
  0x22   :  { %177 = vmatpush3.msra.mxu0 %v54_v4  ;;  %p260_p0 = pnand %p259_p13, %p253_p10 }
  0x23   :  { %178 = vmatprep.subr.mxu0 %v282_v0 }
  0x24   :  { %179 = vmatpush3.msra.mxu0 %v53_v5 }
  0x25   :  { %180 = vmatprep.subr.mxu0 %v282_v0 }
  0x26   :  { %181 = vmatpush3.msra.mxu0 %v52_v6 }
  0x27   :  { %182 = vmatprep.subr.mxu0 %v282_v0 }
  0x28   :  { %183 = vmatpush3.msra.mxu0 %v51_v7 }
  0x29   :  { %184 = vmatprep.subr.mxu0 %v282_v0 }
  0x2a   :  { %185 = vmatpush3.msra.mxu0 %v50_v8 }
  0x2b   :  { %186 = vmatprep.subr.mxu0 %v282_v0 }
  0x2c   :  { %187 = vmatpush3.msra.mxu0 %v49_v9 }
  0x2d   :  { %188 = vmatprep.subr.mxu0 %v282_v0 }
  0x2e   :  { %189 = vmatpush3.msra.mxu0 %v48_v10 }
  0x2f   :  { %190 = vmatprep.subr.mxu0 %v282_v0 }
  0x30   :  { %191 = vmatpush3.msra.mxu0 %v47_v11 }
  0x31   :  { %192 = vmatprep.subr.mxu0 %v282_v0 }
  0x32   :  { %193 = vmatpush3.msra.mxu0 %v46_v12 }
  0x33   :  { %194 = vmatprep.subr.mxu0 %v282_v0 }
  0x34   :  { %195 = vmatpush3.msra.mxu0 %v45_v13 }
  0x35   :  { %196 = vmatprep.subr.mxu0 %v282_v0 }
  0x36   :  { %197 = vmatpush3.msra.mxu0 %v44_v14 }
  0x37   :  { %198 = vmatprep.subr.mxu0 %v282_v0 }
  0x38   :  { %199 = vmatpush3.msra.mxu0 %v43_v15 }
  0x39   :  { %200 = vmatprep.subr.mxu0 %v282_v0 }
  0x3a   :  { %201 = vmatpush3.msra.mxu0 %v42_v16 }
  0x3b   :  { %203 = vmatmul.mubr.f32.vlgmr.msra.gmra.mxu0 %v41_v17 }
  0xfb   :  { %v131_v19 = vpop.f32.mrf.mxu0 }
  0xfc   :  { %v132_v20 = vadd.f32 %v152_v18, %v131_v19 }
  0xfd   :  { %v204_v21 = vpop.f32.mrf.mxu0 }
  0xfe   :  { %135 = vst [vmem:[#allocation7] sm:$0xff] %v132_v20 }
  0xff   :  { %263 = shalt.err (!%p260_p0)
}
 0x100   :  { %145 = dma.vmem_to_hbm [thread:$0]  %s143_s25, 128, %s320_s3, [#allocation4]  }
 0x101   :  { %276 = dma.done.wait [#allocation4], 128  }
 0x102   :  { %277 = vsyncadd [#allocation4], 4294967168 }
 0x103   :  { %149 = vsyncpa [#allocation3], 1 }
 0x104   :  { %150 = vsyncpa [#allocation6], 1 }
 0x105   :  { %151 = vsyncpa [#allocation4], 1 }

</bundles_post_ra>
